<compile_context>
chip_gen: v7x
topology: tpu7x:2x2x1
jax: 0.10.0
libtpu: 0.0.40
codegen_flags: <defaults>
</compile_context>

<pallas_src>
import numpy as np
import jax
import jax.numpy as jnp
from jax.experimental import pallas as pl
from jax.experimental.pallas import tpu as pltpu

LEAKY_SLOPE = 0.01  # F.leaky_relu default negative_slope


def _leaky_relu(x):
    # one mul + one max on the VPU (exact since slope < 1)
    return jnp.maximum(x, LEAKY_SLOPE * x)


def _round_up(x, m):
    return ((x + m - 1) // m) * m


def _select_tile(B, block_b):
    """Pick (TB, B_pad) for the batch (lane) dimension.

    * TB is a multiple of 128 whenever the grid has more than one step (lane
      divisibility rule for the tiled blocks).
    * For B >= 256 the tile is capped at B_pad // 2 so the grid has >= 2 steps
      and the "parallel" batch axis can shard across both TensorCores on v7x.
    * For small B a single full-extent tile (rounded to 8) is used.
    """
    if B < 256:
        tb = _round_up(B, 8)
        return tb, tb
    b128 = _round_up(B, 128)
    tb = min(block_b, b128 // 2)
    tb = max(128, (tb // 128) * 128)
    return tb, _round_up(B, tb)


def critic_kernel(stateT_ref, actionT_ref,
                  w1_ref, b1_ref,
                  w2a_ref, w2b_ref, b2_ref,
                  w3_ref, b3_ref,
                  out_ref):
    mdt = w1_ref.dtype  # MXU operand dtype (f32 or bf16); accumulation is f32

    # ---- layer 1: h1^T = W1 @ state^T + b1 ; leaky_relu ----
    xT = stateT_ref[...].astype(mdt)                            # [S, TB]
    h1 = jnp.dot(w1_ref[...], xT,
                 preferred_element_type=jnp.float32)            # [256, TB]
    h1 = _leaky_relu(h1 + b1_ref[...])

    # ---- layer 2: W2 @ cat([h1, a])^T == W2a @ h1^T + W2b @ a^T ----
    aT = actionT_ref[...].astype(mdt)                           # [A, TB]
    h2 = (jnp.dot(w2a_ref[...], h1.astype(mdt),
                  preferred_element_type=jnp.float32)
          + jnp.dot(w2b_ref[...], aT,
                    preferred_element_type=jnp.float32)
          + b2_ref[...])                                        # [128, TB]
    h2 = _leaky_relu(h2)

    # ---- output head: q^T = W3 @ h2^T -> lane-dense [1, TB] row, no transpose ----
    q = jnp.dot(w3_ref[...], h2.astype(mdt),
                preferred_element_type=jnp.float32)             # [1, TB]
    out_ref[...] = q + b3_ref[0]


def critic_forward(state, action, params, *, block_b=2048,
                   matmul_dtype=jnp.bfloat16, feature_major_inputs=False):
    """state: [B, state_size], action: [B, action_size] -> q: [B, 1].

    If feature_major_inputs=True, state/action are already [state_size, B] /
    [action_size, B] (skips the wrapper-side transpose entirely).
    """
    w1, b1, w2a, w2b, b2, w3, b3 = params

    if feature_major_inputs:
        stateT, actionT = state, action
        S, B = stateT.shape
        A = actionT.shape[0]
    else:
        B, S = state.shape
        A = action.shape[1]
        stateT, actionT = state.T, action.T                     # [S,B], [A,B]

    if jnp.dtype(matmul_dtype) != jnp.dtype(jnp.float32):
        # bf16 MXU operands on all generations; accumulation stays f32 in-kernel.
        w1 = w1.astype(matmul_dtype)
        w2a = w2a.astype(matmul_dtype)
        w2b = w2b.astype(matmul_dtype)
        w3 = w3.astype(matmul_dtype)

    TB, B_pad = _select_tile(B, block_b)
    if B_pad != B:
        pad = B_pad - B
        stateT = jnp.pad(stateT, ((0, 0), (0, pad)))
        actionT = jnp.pad(actionT, ((0, 0), (0, pad)))

    grid = (B_pad // TB,)
    const = lambda i: (0, 0)   # weights/biases: same block every step -> fetched once

    # Advisory cost hint for XLA scheduling around this short kernel.
    flops = 2 * B_pad * (S * 256 + 256 * 128 + A * 128 + 128)
    bytes_accessed = 4 * (B_pad * (S + A + 1)
                          + 256 * S + 256 + 128 * 256 + 128 * A + 128 + 128 + 1)

    out = pl.pallas_call(
        critic_kernel,
        out_shape=jax.ShapeDtypeStruct((1, B_pad), jnp.float32),
        grid_spec=pltpu.PrefetchScalarGridSpec(
            num_scalar_prefetch=0,
            grid=grid,
            in_specs=[
                pl.BlockSpec((S, TB), lambda i: (0, i)),             # state^T tile
                pl.BlockSpec((A, TB), lambda i: (0, i)),             # action^T tile
                pl.BlockSpec((256, S), const),                       # W1  [out,in]
                pl.BlockSpec((256, 1), const),                       # b1 column
                pl.BlockSpec((128, 256), const),                     # W2a
                pl.BlockSpec((128, A), const),                       # W2b
                pl.BlockSpec((128, 1), const),                       # b2 column
                pl.BlockSpec((1, 128), const),                       # W3 row
                pl.BlockSpec(memory_space=pltpu.MemorySpace.SMEM),   # b3 scalar
            ],
            out_specs=pl.BlockSpec((1, TB), lambda i: (0, i)),       # lane-dense q row
        ),
        compiler_params=pltpu.CompilerParams(
            dimension_semantics=("parallel",),   # batch tiles shard across TCs (v7x)
            vmem_limit_bytes=48 * 1024 * 1024,   # v7x-safe, ample for TB<=4096
        ),
        cost_estimate=pl.CostEstimate(flops=flops, transcendentals=0,
                                      bytes_accessed=bytes_accessed),
    )(stateT, actionT, w1, b1, w2a, w2b, b2, w3, b3)

    return out[0, :B][:, None]   # back to the PyTorch [B, 1] shape


def init_params(key, state_size, action_size):
    """Deterministic init mirroring CriticNetwork.__init__ / reset_parameters.

    hidden_init uses weight.size()[0] == out_features as the "fan in" (a quirk
    of the original code), so lim = 1/sqrt(out_features) for W1/W2.  Biases keep
    PyTorch's default Linear init range +-1/sqrt(in_features).  Weights are kept
    in PyTorch [out, in] layout (the transposed-dataflow kernel uses them as-is);
    biases are stored as [out, 1] columns.
    """
    k = jax.random.split(key, 6)

    # Layer 1: Linear(state_size, 256)
    lim1_w = 1.0 / np.sqrt(256.0)
    lim1_b = 1.0 / np.sqrt(state_size)
    w1 = jax.random.uniform(k[0], (256, state_size), jnp.float32, -lim1_w, lim1_w)
    b1 = jax.random.uniform(k[1], (256, 1), jnp.float32, -lim1_b, lim1_b)

    # Layer 2: Linear(256 + action_size, 128) — split into h1 block / action block
    lim2_w = 1.0 / np.sqrt(128.0)
    lim2_b = 1.0 / np.sqrt(256.0 + action_size)
    w2 = jax.random.uniform(k[2], (128, 256 + action_size), jnp.float32,
                            -lim2_w, lim2_w)
    w2a, w2b = w2[:, :256], w2[:, 256:]
    b2 = jax.random.uniform(k[3], (128, 1), jnp.float32, -lim2_b, lim2_b)

    # Output: Linear(128, 1), weights uniform(-3e-3, 3e-3)
    lim3_b = 1.0 / np.sqrt(128.0)
    w3 = jax.random.uniform(k[4], (1, 128), jnp.float32, -0.003, 0.003)
    b3 = jax.random.uniform(k[5], (1,), jnp.float32, -lim3_b, lim3_b)

    return (w1, b1, w2a, w2b, b2, w3, b3)


def critic_reference(state, action, params):
    """float64 numpy reference for correctness checking."""
    w1, b1, w2a, w2b, b2, w3, b3 = [np.asarray(p, np.float64) for p in params]
    s = np.asarray(state, np.float64)
    a = np.asarray(action, np.float64)
    lrelu = lambda x: np.maximum(x, LEAKY_SLOPE * x)
    h1 = lrelu(s @ w1.T + b1.T)
    h2 = lrelu(h1 @ w2a.T + a @ w2b.T + b2.T)
    return h2 @ w3.T + b3


if __name__ == "__main__":
    state_size, action_size, batch = 16, 4, 8

    key = jax.random.PRNGKey(0)
    kp, ks, ka = jax.random.split(key, 3)

    params = init_params(kp, state_size, action_size)
    state = jax.random.normal(ks, (batch, state_size), jnp.float32)
    action = jax.random.normal(ka, (batch, action_size), jnp.float32)
    ref = critic_reference(state, action, params)

    # Default path: bf16 MXU operands, f32 accumulation (loose tolerance by design).
    out_bf16 = jax.block_until_ready(critic_forward(state, action, params))
    assert out_bf16.shape == (batch, 1)
    np.testing.assert_allclose(np.asarray(out_bf16), ref, rtol=5e-2, atol=1e-2)

    # Full-f32 operands: tight check against the float64 reference.
    out_f32 = jax.block_until_ready(
        critic_forward(state, action, params, matmul_dtype=jnp.float32))
    np.testing.assert_allclose(np.asarray(out_f32), ref, rtol=1e-4, atol=1e-4)

    # Multi-step grid + padding path (TB=128, grid=3) at a still-small size.
    _, ks2, ka2 = jax.random.split(jax.random.PRNGKey(1), 3)
    batch2 = 300
    state2 = jax.random.normal(ks2, (batch2, state_size), jnp.float32)
    action2 = jax.random.normal(ka2, (batch2, action_size), jnp.float32)
    ref2 = critic_reference(state2, action2, params)
    out2 = jax.block_until_ready(
        critic_forward(state2, action2, params, matmul_dtype=jnp.float32))
    assert out2.shape == (batch2, 1)
    np.testing.assert_allclose(np.asarray(out2), ref2, rtol=1e-4, atol=1e-4)

    # Feature-major caller path (replay buffer stored [feat, B]): skips the
    # wrapper transpose, kernel is identical.
    out3 = jax.block_until_ready(
        critic_forward(state2.T, action2.T, params,
                       matmul_dtype=jnp.float32, feature_major_inputs=True))
    np.testing.assert_allclose(np.asarray(out3), ref2, rtol=1e-4, atol=1e-4)

    print("KERNEL_OK")
</pallas_src>

<mosaic_0001>
module attributes {stable_mosaic.version = 11 : i64} {
  func.func @critic_kernel(%arg0: i32, %arg1: memref<16x8xf32, #tpu.memory_space<vmem>>, %arg2: memref<4x8xf32, #tpu.memory_space<vmem>>, %arg3: memref<256x16xbf16, #tpu.memory_space<vmem>>, %arg4: memref<256x1xf32, #tpu.memory_space<vmem>>, %arg5: memref<128x256xbf16, #tpu.memory_space<vmem>>, %arg6: memref<128x4xbf16, #tpu.memory_space<vmem>>, %arg7: memref<128x1xf32, #tpu.memory_space<vmem>>, %arg8: memref<1x128xbf16, #tpu.memory_space<vmem>>, %arg9: memref<1xf32, #tpu.memory_space<smem>>, %arg10: memref<1x8xf32, #tpu.memory_space<vmem>>) attributes {dimension_semantics = [#tpu.dimension_semantics<parallel>], iteration_bounds = array<i64: 1>, scalar_prefetch = 0 : i64, scratch_operands = 0 : i64, tpu.core_type = #tpu.core_type<tc>, window_params = [{transform_indices = @transform_0, window_bounds = array<i64: 16, 8>}, {transform_indices = @transform_1, window_bounds = array<i64: 4, 8>}, {pipeline_mode = #tpu.pipeline_mode<synchronous>, transform_indices = @transform_2, window_bounds = array<i64: 256, 16>}, {pipeline_mode = #tpu.pipeline_mode<synchronous>, transform_indices = @transform_3, window_bounds = array<i64: 256, 1>}, {pipeline_mode = #tpu.pipeline_mode<synchronous>, transform_indices = @transform_4, window_bounds = array<i64: 128, 256>}, {pipeline_mode = #tpu.pipeline_mode<synchronous>, transform_indices = @transform_5, window_bounds = array<i64: 128, 4>}, {pipeline_mode = #tpu.pipeline_mode<synchronous>, transform_indices = @transform_6, window_bounds = array<i64: 128, 1>}, {pipeline_mode = #tpu.pipeline_mode<synchronous>, transform_indices = @transform_7, window_bounds = array<i64: 1, 128>}, {transform_indices = @transform_8, window_bounds = array<i64: 1>}, {transform_indices = @transform_9, window_bounds = array<i64: 1, 8>}]} {
    %c0 = arith.constant 0 : index
    %c0_0 = arith.constant 0 : index
    %0 = vector.load %arg1[%c0, %c0_0] : memref<16x8xf32, #tpu.memory_space<vmem>>, vector<16x8xf32>
    %1 = arith.truncf %0 : vector<16x8xf32> to vector<16x8xbf16>
    %c0_1 = arith.constant 0 : index
    %c0_2 = arith.constant 0 : index
    %2 = vector.load %arg3[%c0_1, %c0_2] : memref<256x16xbf16, #tpu.memory_space<vmem>>, vector<256x16xbf16>
    %cst = arith.constant dense<0.000000e+00> : vector<256x8xf32>
    %3 = tpu.matmul %2, %1, %cst {dimension_numbers = #tpu.dot_dimension_numbers<[1], [0], [0], [1], [0, 0, 1, 1], [], []>} : vector<256x16xbf16>, vector<16x8xbf16>, vector<256x8xf32> -> vector<256x8xf32>
    %c0_3 = arith.constant 0 : index
    %c0_4 = arith.constant 0 : index
    %4 = vector.load %arg4[%c0_3, %c0_4] : memref<256x1xf32, #tpu.memory_space<vmem>>, vector<256x1xf32>
    %5 = vector.broadcast %4 : vector<256x1xf32> to vector<256x8xf32>
    %6 = arith.addf %3, %5 : vector<256x8xf32>
    %cst_5 = arith.constant 0.00999999977 : f32
    %7 = vector.broadcast %cst_5 : f32 to vector<256x8xf32>
    %8 = arith.mulf %7, %6 : vector<256x8xf32>
    %9 = arith.maximumf %6, %8 : vector<256x8xf32>
    %c0_6 = arith.constant 0 : index
    %c0_7 = arith.constant 0 : index
    %10 = vector.load %arg2[%c0_6, %c0_7] : memref<4x8xf32, #tpu.memory_space<vmem>>, vector<4x8xf32>
    %11 = arith.truncf %10 : vector<4x8xf32> to vector<4x8xbf16>
    %c0_8 = arith.constant 0 : index
    %c0_9 = arith.constant 0 : index
    %12 = vector.load %arg5[%c0_8, %c0_9] : memref<128x256xbf16, #tpu.memory_space<vmem>>, vector<128x256xbf16>
    %13 = arith.truncf %9 : vector<256x8xf32> to vector<256x8xbf16>
    %cst_10 = arith.constant dense<0.000000e+00> : vector<128x8xf32>
    %14 = tpu.matmul %12, %13, %cst_10 {dimension_numbers = #tpu.dot_dimension_numbers<[1], [0], [0], [1], [0, 0, 1, 1], [], []>} : vector<128x256xbf16>, vector<256x8xbf16>, vector<128x8xf32> -> vector<128x8xf32>
    %c0_11 = arith.constant 0 : index
    %c0_12 = arith.constant 0 : index
    %15 = vector.load %arg6[%c0_11, %c0_12] : memref<128x4xbf16, #tpu.memory_space<vmem>>, vector<128x4xbf16>
    %cst_13 = arith.constant dense<0.000000e+00> : vector<128x8xf32>
    %16 = tpu.matmul %15, %11, %cst_13 {dimension_numbers = #tpu.dot_dimension_numbers<[1], [0], [0], [1], [0, 0, 1, 1], [], []>} : vector<128x4xbf16>, vector<4x8xbf16>, vector<128x8xf32> -> vector<128x8xf32>
    %17 = arith.addf %14, %16 : vector<128x8xf32>
    %c0_14 = arith.constant 0 : index
    %c0_15 = arith.constant 0 : index
    %18 = vector.load %arg7[%c0_14, %c0_15] : memref<128x1xf32, #tpu.memory_space<vmem>>, vector<128x1xf32>
    %19 = vector.broadcast %18 : vector<128x1xf32> to vector<128x8xf32>
    %20 = arith.addf %17, %19 : vector<128x8xf32>
    %cst_16 = arith.constant 0.00999999977 : f32
    %21 = vector.broadcast %cst_16 : f32 to vector<128x8xf32>
    %22 = arith.mulf %21, %20 : vector<128x8xf32>
    %23 = arith.maximumf %20, %22 : vector<128x8xf32>
    %c0_17 = arith.constant 0 : index
    %c0_18 = arith.constant 0 : index
    %24 = vector.load %arg8[%c0_17, %c0_18] : memref<1x128xbf16, #tpu.memory_space<vmem>>, vector<1x128xbf16>
    %25 = arith.truncf %23 : vector<128x8xf32> to vector<128x8xbf16>
    %cst_19 = arith.constant dense<0.000000e+00> : vector<1x8xf32>
    %26 = tpu.matmul %24, %25, %cst_19 {dimension_numbers = #tpu.dot_dimension_numbers<[1], [0], [0], [1], [0, 0, 1, 1], [], []>} : vector<1x128xbf16>, vector<128x8xbf16>, vector<1x8xf32> -> vector<1x8xf32>
    %c0_20 = arith.constant 0 : index
    %27 = memref.load %arg9[%c0_20] : memref<1xf32, #tpu.memory_space<smem>>
    %28 = vector.broadcast %27 : f32 to vector<1x8xf32>
    %29 = arith.addf %26, %28 : vector<1x8xf32>
    %c0_21 = arith.constant 0 : index
    %c0_22 = arith.constant 0 : index
    %30 = vector.load %arg10[%c0_21, %c0_22] : memref<1x8xf32, #tpu.memory_space<vmem>>, vector<1x8xf32>
    tpu.vector_store %arg10[%c0_21, %c0_22], %29 {strides = array<i32>} : memref<1x8xf32, #tpu.memory_space<vmem>>, vector<1x8xf32>,
    return
  }
  func.func @transform_0(%arg0: i32) -> (i32, i32) {
    %c0_i32 = arith.constant 0 : i32
    %c0_i32_0 = arith.constant 0 : i32
    return %c0_i32, %arg0 : i32, i32
  }
  func.func @transform_1(%arg0: i32) -> (i32, i32) {
    %c0_i32 = arith.constant 0 : i32
    %c0_i32_0 = arith.constant 0 : i32
    return %c0_i32, %arg0 : i32, i32
  }
  func.func @transform_2(%arg0: i32) -> (i32, i32) {
    %c0_i32 = arith.constant 0 : i32
    %c0_i32_0 = arith.constant 0 : i32
    %c0_i32_1 = arith.constant 0 : i32
    return %c0_i32, %c0_i32_0 : i32, i32
  }
  func.func @transform_3(%arg0: i32) -> (i32, i32) {
    %c0_i32 = arith.constant 0 : i32
    %c0_i32_0 = arith.constant 0 : i32
    %c0_i32_1 = arith.constant 0 : i32
    return %c0_i32, %c0_i32_0 : i32, i32
  }
  func.func @transform_4(%arg0: i32) -> (i32, i32) {
    %c0_i32 = arith.constant 0 : i32
    %c0_i32_0 = arith.constant 0 : i32
    %c0_i32_1 = arith.constant 0 : i32
    return %c0_i32, %c0_i32_0 : i32, i32
  }
  func.func @transform_5(%arg0: i32) -> (i32, i32) {
    %c0_i32 = arith.constant 0 : i32
    %c0_i32_0 = arith.constant 0 : i32
    %c0_i32_1 = arith.constant 0 : i32
    return %c0_i32, %c0_i32_0 : i32, i32
  }
  func.func @transform_6(%arg0: i32) -> (i32, i32) {
    %c0_i32 = arith.constant 0 : i32
    %c0_i32_0 = arith.constant 0 : i32
    %c0_i32_1 = arith.constant 0 : i32
    return %c0_i32, %c0_i32_0 : i32, i32
  }
  func.func @transform_7(%arg0: i32) -> (i32, i32) {
    %c0_i32 = arith.constant 0 : i32
    %c0_i32_0 = arith.constant 0 : i32
    %c0_i32_1 = arith.constant 0 : i32
    return %c0_i32, %c0_i32_0 : i32, i32
  }
  func.func @transform_8(%arg0: i32) -> i32 {
    %c0_i32 = arith.constant 0 : i32
    %c0_i32_0 = arith.constant 0 : i32
    return %c0_i32 : i32
  }
  func.func @transform_9(%arg0: i32) -> (i32, i32) {
    %c0_i32 = arith.constant 0 : i32
    %c0_i32_0 = arith.constant 0 : i32
    return %c0_i32, %arg0 : i32, i32
  }
}

</mosaic_0001>

<bundles_post_ra>
// kernel: tpu_custom_call.1
= control target key start
LH: loop header
LB: loop body
LE: loop exit
PB: predicated region body
PF: predicated region fallthrough
CT: control target
= control target key end

     0   :  { %v1534_v3 = vmov 0   ;;  %vm342_vm0 = vcmask 130048   ;;  %s2014_s0 = inlined_call_operand.vmem [shape: f32[16,8], index: 0, kind: input, shape index: {}]   ;;  %s2015_s1 = inlined_call_operand.vmem [shape: f32[4,8], index: 1, kind: input, shape index: {}]   ;;  %s2016_s2 = inlined_call_operand.vmem [shape: bf16[256,16], index: 2, kind: input, shape index: {}]   ;;  %s2017_s3 = inlined_call_operand.vmem [shape: f32[256,1], index: 3, kind: input, shape index: {}]   ;;  %s2018_s4 = inlined_call_operand.vmem [shape: bf16[128,256], index: 4, kind: input, shape index: {}]   ;;  %s2019_s5 = inlined_call_operand.vmem [shape: bf16[128,4], index: 5, kind: input, shape index: {}]   ;;  %s2020_s6 = inlined_call_operand.vmem [shape: f32[128,1], index: 6, kind: input, shape index: {}]   ;;  %s2021_s7 = inlined_call_operand.vmem [shape: bf16[1,128], index: 7, kind: input, shape index: {}]   ;;  %s2022_s8 = inlined_call_operand.<no memory space> [shape: f32[1], index: 8, kind: input, shape index: {}]   ;;  %s2023_s9 = inlined_call_operand.hbm [shape: f32[1,8], index: 9, kind: output, shape index: {}]  }
   0x1   :  { %v86_v0 = vld [vmem:[%s2017_s3 + $0x80] sm:$0xff]  ;;  %1461 = vset.pattern.permute.xlu1 %v1534_v3  ;;  %1460 = vset.pattern.permute.xlu0 %v1534_v3  ;;  %v36_v4 = vld [vmem:[%s2014_s0 + $0x8] sm:$0xff]  ;;  %v1464_v10 = vld [vmem:[%s2016_s2 + $0x10] sm:$0xff]  }
   0x2   :  { %v70_v1 = vld [vmem:[%s2017_s3] sm:$0xff]  ;;  %184 = vperm.xlu0 %1460, %v86_v0   ;;  %v87_v7 = vld [vmem:[%s2017_s3 + $0x88] sm:$0xff]  ;;  %v88_v11 = vld [vmem:[%s2017_s3 + $0x90] sm:$0xff] }
   0x3   :  { %v35_v2 = vld [vmem:[%s2014_s0] sm:$0xff]  ;;  %104 = vperm.xlu1 %1461, %v70_v1   ;;  %v71_v8 = vld [vmem:[%s2017_s3 + $0x8] sm:$0xff]  ;;  %v89_v12 = vld [vmem:[%s2017_s3 + $0x98] sm:$0xff] }
   0x4   :  { %v37_v5 = vpack.c.bf16 %v36_v4, %v35_v2  ;;  %v1462_v6 = vld [vmem:[%s2016_s2] sm:$0xff]   ;;  %v1463_v9 = vld [vmem:[%s2016_s2 + $0x8] sm:$0xff]   ;;  %v72_v13 = vld [vmem:[%s2017_s3 + $0x10] sm:$0xff] }
   0x5   :  { %1385 = vmatprep.mubr.msk.bf16.mxu0 %vm342_vm0, %v1462_v6  ;;  %v73_v14 = vld [vmem:[%s2017_s3 + $0x18] sm:$0xff]  ;;  %v1466_v16 = vld [vmem:[%s2016_s2 + $0x20] sm:$0xff]   ;;  %v91_v18 = vld [vmem:[%s2017_s3 + $0xa8] sm:$0xff] }
   0x6   :  { %1383 = vmatprep.subr.bf16.mxu0 %v37_v5  ;;  %189 = vperm.xlu0 %1460, %v87_v7   ;;  %v1465_v15 = vld [vmem:[%s2016_s2 + $0x18] sm:$0xff]   ;;  %v90_v17 = vld [vmem:[%s2017_s3 + $0xa0] sm:$0xff]  ;;  %v75_v20 = vld [vmem:[%s2017_s3 + $0x28] sm:$0xff] }
   0x7   :  { %1384 = vmatpush3.bf16.msra.mxu0 %v37_v5  ;;  %109 = vperm.xlu1 %1461, %v71_v8   ;;  %v74_v19 = vld [vmem:[%s2017_s3 + $0x20] sm:$0xff]  ;;  %v1467_v21 = vld [vmem:[%s2016_s2 + $0x28] sm:$0xff]   ;;  %v1468_v22 = vld [vmem:[%s2016_s2 + $0x30] sm:$0xff]  }
   0x8   :  { %v92_v23 = vld [vmem:[%s2017_s3 + $0xb0] sm:$0xff]  ;;  %v93_v24 = vld [vmem:[%s2017_s3 + $0xb8] sm:$0xff]  ;;  %v1470_v28 = vld [vmem:[%s2016_s2 + $0x40] sm:$0xff]  }
   0x9   :  { %v76_v25 = vld [vmem:[%s2017_s3 + $0x30] sm:$0xff]  ;;  %v77_v26 = vld [vmem:[%s2017_s3 + $0x38] sm:$0xff]  ;;  %v94_v29 = vld [vmem:[%s2017_s3 + $0xc0] sm:$0xff] }
   0xa   :  { %1386 = vmatmul.mubr.msk.bf16.vlgmr.msra.gmra.mrb[0].mxu0 %vm342_vm0, %v1463_v9  ;;  %194 = vperm.xlu0 %1460, %v88_v11   ;;  %v1469_v27 = vld [vmem:[%s2016_s2 + $0x38] sm:$0xff]   ;;  %v95_v30 = vld [vmem:[%s2017_s3 + $0xc8] sm:$0xff]  ;;  %v78_v31 = vld [vmem:[%s2017_s3 + $0x40] sm:$0xff] }
   0xb   :  { %1389 = vmatprep.mubr.msk.bf16.mxu0 %vm342_vm0, %v1464_v10  ;;  %199 = vperm.xlu1 %1461, %v89_v12   ;;  %v79_v32 = vld [vmem:[%s2017_s3 + $0x48] sm:$0xff]  ;;  %v1472_v34 = vld [vmem:[%s2016_s2 + $0x50] sm:$0xff]   ;;  %v97_v36 = vld [vmem:[%s2017_s3 + $0xd8] sm:$0xff] }
   0xc   :  { %v1471_v33 = vld [vmem:[%s2016_s2 + $0x48] sm:$0xff]   ;;  %v96_v35 = vld [vmem:[%s2017_s3 + $0xd0] sm:$0xff]  ;;  %v81_v38 = vld [vmem:[%s2017_s3 + $0x58] sm:$0xff] }
   0xd   :  { %v80_v37 = vld [vmem:[%s2017_s3 + $0x50] sm:$0xff] }
   0xe   :  { %114 = vperm.xlu0 %1460, %v72_v13  }
   0xf   :  { %119 = vperm.xlu1 %1461, %v73_v14  }
  0x12   :  { %1390 = vmatmul.mubr.msk.bf16.gmra.mrb[4].mxu0 %vm342_vm0, %v1465_v15  ;;  %204 = vperm.xlu0 %1460, %v90_v17  }
  0x13   :  { %1393 = vmatprep.mubr.msk.bf16.mxu0 %vm342_vm0, %v1466_v16  ;;  %209 = vperm.xlu1 %1461, %v91_v18  }
  0x16   :  { %124 = vperm.xlu0 %1460, %v74_v19  }
  0x17   :  { %129 = vperm.xlu1 %1461, %v75_v20  }
  0x1a   :  { %1394 = vmatmul.mubr.msk.bf16.gmra.mrb[8].mxu0 %vm342_vm0, %v1467_v21  ;;  %214 = vperm.xlu0 %1460, %v92_v23  }
  0x1b   :  { %1397 = vmatprep.mubr.msk.bf16.mxu0 %vm342_vm0, %v1468_v22  ;;  %219 = vperm.xlu1 %1461, %v93_v24  }
  0x1e   :  { %134 = vperm.xlu0 %1460, %v76_v25  }
  0x1f   :  { %139 = vperm.xlu1 %1461, %v77_v26  }
  0x22   :  { %1398 = vmatmul.mubr.msk.bf16.gmra.mrb[12].mxu0 %vm342_vm0, %v1469_v27  ;;  %224 = vperm.xlu0 %1460, %v94_v29  }
  0x23   :  { %1401 = vmatprep.mubr.msk.bf16.mxu0 %vm342_vm0, %v1470_v28  ;;  %229 = vperm.xlu1 %1461, %v95_v30  }
  0x26   :  { %144 = vperm.xlu0 %1460, %v78_v31  }
  0x27   :  { %149 = vperm.xlu1 %1461, %v79_v32  }
  0x2a   :  { %1402 = vmatmul.mubr.msk.bf16.gmra.mrb[16].mxu0 %vm342_vm0, %v1471_v33  ;;  %234 = vperm.xlu0 %1460, %v96_v35  }
  0x2b   :  { %1405 = vmatprep.mubr.msk.bf16.mxu0 %vm342_vm0, %v1472_v34  ;;  %239 = vperm.xlu1 %1461, %v97_v36  }
  0x2c   :  { %15 = vsyncpa [#allocation4], 0  ;;  %v1473_v39 = vld [vmem:[%s2016_s2 + $0x58] sm:$0xff]   ;;  %v1474_v40 = vld [vmem:[%s2016_s2 + $0x60] sm:$0xff]   ;;  %vm731_vm1 = vcmask 1041408   ;;  %vm706_vm2 = vcmask 31744  }
  0x2d   :  { %v98_v41 = vld [vmem:[%s2017_s3 + $0xe0] sm:$0xff]  ;;  %v99_v42 = vld [vmem:[%s2017_s3 + $0xe8] sm:$0xff]  ;;  %v1476_v46 = vld [vmem:[%s2016_s2 + $0x70] sm:$0xff]   ;;  %vm1536_vm3 = vmmov 0   ;;  %vm1204_vm4 = vcmask 57344  }
  0x2e   :  { %154 = vperm.xlu0 %1460, %v80_v37   ;;  %v82_v43 = vld [vmem:[%s2017_s3 + $0x60] sm:$0xff]  ;;  %v83_v44 = vld [vmem:[%s2017_s3 + $0x68] sm:$0xff]  ;;  %v100_v47 = vld [vmem:[%s2017_s3 + $0xf0] sm:$0xff] }
  0x2f   :  { %159 = vperm.xlu1 %1461, %v81_v38   ;;  %v1475_v45 = vld [vmem:[%s2016_s2 + $0x68] sm:$0xff]   ;;  %v101_v48 = vld [vmem:[%s2017_s3 + $0xf8] sm:$0xff]  ;;  %v84_v49 = vld [vmem:[%s2017_s3 + $0x70] sm:$0xff] }
  0x30   :  { %v85_v50 = vld [vmem:[%s2017_s3 + $0x78] sm:$0xff]  ;;  %v1009_v52 = vld [vmem:[%s2020_s6] sm:$0xff]  ;;  %v1010_v53 = vld [vmem:[%s2020_s6 + $0x8] sm:$0xff] }
  0x31   :  { %v1477_v51 = vld [vmem:[%s2016_s2 + $0x78] sm:$0xff]   ;;  %v1011_v54 = vld [vmem:[%s2020_s6 + $0x10] sm:$0xff]  ;;  %v1013_v56 = vld [vmem:[%s2020_s6 + $0x20] sm:$0xff]  ;;  %s1537_s2 = smov [#allocation3]  }
  0x32   :  { %1406 = vmatmul.mubr.msk.bf16.gmra.mrb[20].mxu0 %vm342_vm0, %v1473_v39  ;;  %244 = vperm.xlu0 %1460, %v98_v41   ;;  %v1012_v55 = vld [vmem:[%s2020_s6 + $0x18] sm:$0xff]  ;;  %v1014_v57 = vld [vmem:[%s2020_s6 + $0x28] sm:$0xff]  ;;  %v1015_v58 = vld [vmem:[%s2020_s6 + $0x30] sm:$0xff]  ;;  %s1212_s26 = sshll.u32 %s1537_s2, 4  ;;  %s1213_s26 = int_to_ptr.vmem [resolvable:$true] %s1212_s26 }
  0x33   :  { %1409 = vmatprep.mubr.msk.bf16.mxu0 %vm342_vm0, %v1474_v40  ;;  %249 = vperm.xlu1 %1461, %v99_v42   ;;  %v1016_v59 = vld [vmem:[%s2020_s6 + $0x38] sm:$0xff]  ;;  %v1017_v60 = vld [vmem:[%s2020_s6 + $0x40] sm:$0xff]  ;;  %v1018_v61 = vld [vmem:[%s2020_s6 + $0x48] sm:$0xff]  ;;  %s1510_s27 = scalar_lea.vmem %s1213_s26, 16  ;;  %s1514_s28 = scalar_lea.vmem %s1213_s26, 32 }
  0x34   :  { %v1019_v62 = vld [vmem:[%s2020_s6 + $0x50] sm:$0xff]  ;;  %v1020_v63 = vld [vmem:[%s2020_s6 + $0x58] sm:$0xff]  ;;  %v1021_v0 = vld [vmem:[%s2020_s6 + $0x60] sm:$0xff]  ;;  %p1511_p0 = scmp.ne.s32.totalorder %s1213_s26, %s1510_s27  ;;  %p1515_p1 = scmp.lt.s32.totalorder %s1213_s26, %s1213_s26 }
  0x35   :  { %v1022_v1 = vld [vmem:[%s2020_s6 + $0x68] sm:$0xff]  ;;  %v1023_v2 = vld [vmem:[%s2020_s6 + $0x70] sm:$0xff]  ;;  %v1024_v3 = vld [vmem:[%s2020_s6 + $0x78] sm:$0xff]  ;;  %p1516_p2 = scmp.lt.s32.totalorder %s1514_s28, %s1510_s27 }
  0x36   :  { %164 = vperm.xlu0 %1460, %v82_v43   ;;  %v616_v4 = vld [vmem:[%s2015_s1] sm:$0xf]  ;;  %v1479_v8 = vld [vmem:[%s2019_s5 + $0x8] sm:$0xff]   ;;  %v1480_v9 = vld [vmem:[%s2019_s5 + $0x10] sm:$0xff]  }
  0x37   :  { %169 = vperm.xlu1 %1461, %v83_v44   ;;  %v617_v5 = vpack.c.bf16 %v616_v4, %v616_v4  ;;  %v1478_v7 = vld [vmem:[%s2019_s5] sm:$0xff]   ;;  %v1481_v10 = vld [vmem:[%s2019_s5 + $0x18] sm:$0xff]   ;;  %v1483_v12 = vld [vmem:[%s2019_s5 + $0x28] sm:$0xff]   ;;  %p1517_p3 = por %p1516_p2, %p1515_p1 }
  0x38   :  { %1419 = vmatprep.mubr.msk.bf16.mxu1 %vm706_vm2, %v1478_v7  ;;  %v1482_v11 = vld [vmem:[%s2019_s5 + $0x20] sm:$0xff]   ;;  %v1484_v14 = vld [vmem:[%s2019_s5 + $0x30] sm:$0xff]   ;;  %v1485_v15 = vld [vmem:[%s2019_s5 + $0x38] sm:$0xff]  }
  0x39   :  { %1455 = vmatprep.subr.msk.bf16.mxu1 %vm731_vm1, %v617_v5  ;;  %v733_v6 = vsel %vm731_vm1, %v617_v5, 0  ;;  %v1488_v19 = vld [vmem:[%s2018_s4 + $0x4] ss:$8 sps:$4 sm:$0xff]   ;;  %p1518_p4 = pnand %p1517_p3, %p1511_p0 }
  0x3a   :  { %1410 = vmatmul.mubr.msk.bf16.gmra.mrb[24].mxu0 %vm342_vm0, %v1475_v45  ;;  %254 = vperm.xlu0 %1460, %v100_v47  }
  0x3b   :  { %1413 = vmatprep.mubr.msk.bf16.mxu0 %vm342_vm0, %v1476_v46  ;;  %259 = vperm.xlu1 %1461, %v101_v48  }
  0x3c   :  { %1418 = vmatpush3.bf16.msra.mxu1 %v733_v6 }
  0x3e   :  { %174 = vperm.xlu0 %1460, %v84_v49  }
  0x3f   :  { %179 = vperm.xlu1 %1461, %v85_v50   ;;  %1420 = vmatmul.mubr.msk.bf16.vlgmr.msra.gmra.mrb[0].mxu1 %vm706_vm2, %v1479_v8 }
  0x40   :  { %1423 = vmatprep.mubr.msk.bf16.mxu1 %vm706_vm2, %v1480_v9 }
  0x42   :  { %1414 = vmatmul.mubr.msk.bf16.gmra.mrb[28].mxu0 %vm342_vm0, %v1477_v51  ;;  %1027 = vperm.xlu0 %1460, %v1009_v52  }
  0x43   :  { %1032 = vperm.xlu1 %1461, %v1010_v53  }
  0x46   :  { %1037 = vperm.xlu0 %1460, %v1011_v54  }
  0x47   :  { %1042 = vperm.xlu1 %1461, %v1012_v55   ;;  %1424 = vmatmul.mubr.msk.bf16.gmra.mrb[4].mxu1 %vm706_vm2, %v1481_v10 }
  0x48   :  { %1427 = vmatprep.mubr.msk.bf16.mxu1 %vm706_vm2, %v1482_v11 }
  0x4a   :  { %1047 = vperm.xlu0 %1460, %v1013_v56  }
  0x4b   :  { %1052 = vperm.xlu1 %1461, %v1014_v57  }
  0x4e   :  { %1057 = vperm.xlu0 %1460, %v1015_v58  }
  0x4f   :  { %1062 = vperm.xlu1 %1461, %v1016_v59   ;;  %1428 = vmatmul.mubr.msk.bf16.gmra.mrb[8].mxu1 %vm706_vm2, %v1483_v12 }
  0x50   :  { %1431 = vmatprep.mubr.msk.bf16.mxu1 %vm706_vm2, %v1484_v14 }
  0x52   :  { %1067 = vperm.xlu0 %1460, %v1017_v60  }
  0x53   :  { %1072 = vperm.xlu1 %1461, %v1018_v61  }
  0x56   :  { %1077 = vperm.xlu0 %1460, %v1019_v62  }
  0x57   :  { %1082 = vperm.xlu1 %1461, %v1020_v63   ;;  %1432 = vmatmul.mubr.msk.bf16.gmra.mrb[12].mxu1 %vm706_vm2, %v1485_v15 }
  0x58   :  { %944 = vmatprep.mubr.bf16.mxu1 %v1488_v19 }
  0x5a   :  { %1087 = vperm.xlu0 %1460, %v1021_v0  }
  0x5b   :  { %1092 = vperm.xlu1 %1461, %v1022_v1  }
  0x5e   :  { %1097 = vperm.xlu0 %1460, %v1023_v2  }
  0x5f   :  { %1102 = vperm.xlu1 %1461, %v1024_v3  }
  0x81   :  { %v1829_v13 = vpop.permute.xlu0 %184 }
  0x82   :  { %v105_v16 = vpop.permute.xlu1 %104 }
  0x85   :  { %v1839_v17 = vpop.permute.xlu0 %189 }
  0x86   :  { %v110_v18 = vpop.permute.xlu1 %109 }
  0x89   :  { %v1844_v20 = vpop.permute.xlu0 %194 }
  0x8a   :  { %v1846_v21 = vpop.permute.xlu1 %199 }
  0x8d   :  { %v115_v22 = vpop.permute.xlu0 %114 }
  0x8e   :  { %v120_v23 = vpop.permute.xlu1 %119 }
  0x91   :  { %v1848_v24 = vpop.permute.xlu0 %204 }
  0x92   :  { %v1850_v25 = vpop.permute.xlu1 %209 }
  0x95   :  { %v125_v26 = vpop.permute.xlu0 %124 }
  0x96   :  { %v130_v27 = vpop.permute.xlu1 %129 }
  0x99   :  { %v1852_v28 = vpop.permute.xlu0 %214 }
  0x9a   :  { %v1854_v29 = vpop.permute.xlu1 %219 }
  0x9d   :  { %v135_v30 = vpop.permute.xlu0 %134 }
  0x9e   :  { %v140_v31 = vpop.permute.xlu1 %139 }
  0xa1   :  { %v1856_v32 = vpop.permute.xlu0 %224 }
  0xa2   :  { %v1858_v33 = vpop.permute.xlu1 %229 }
  0xa5   :  { %v145_v34 = vpop.permute.xlu0 %144 }
  0xa6   :  { %v150_v35 = vpop.permute.xlu1 %149 }
  0xa9   :  { %v1860_v36 = vpop.permute.xlu0 %234 }
  0xaa   :  { %v1862_v37 = vpop.permute.xlu1 %239 }
  0xad   :  { %v155_v38 = vpop.permute.xlu0 %154 }
  0xae   :  { %v160_v42 = vpop.permute.xlu1 %159 }
  0xb1   :  { %v1864_v51 = vpop.permute.xlu0 %244 }
  0xb2   :  { %v1866_v55 = vpop.permute.xlu1 %249 }
  0xb5   :  { %v165_v4 = vpop.permute.xlu0 %164 }
  0xb6   :  { %v170_v8 = vpop.permute.xlu1 %169 }
  0xdd   :  { %v1387_v39 = vpop.f32.mrb[0].mxu0 }
  0xde   :  { %v434_v40 = vadd.f32 %v1387_v39, %v115_v22  ;;  %v425_v41 = vpop.f32.mrb[1].mxu0  ;;  %v1874_v22 = vpop.permute.xlu0 %254 }
  0xdf   :  { %v426_v43 = vadd.f32 %v425_v41, %v105_v16  ;;  %v1388_v44 = vpop.f32.mrb[2].mxu0 }
  0xe0   :  { %v554_v45 = vmul.f32 0.01, %v434_v40  ;;  %v437_v46 = vadd.f32 %v1388_v44, %v120_v23  ;;  %v428_v47 = vpop.f32.mrb[3].mxu0 }
  0xe1   :  { %v552_v48 = vmul.f32 0.01, %v426_v43  ;;  %v429_v49 = vadd.f32 %v428_v47, %v110_v18 }
  0xe2   :  { %v555_v50 = vmul.f32 0.01, %v437_v46  ;;  %v586_v53 = vmax.f32 %v434_v40, %v554_v45  ;;  %v1878_v40 = vpop.permute.xlu1 %259 }
  0xe3   :  { %v553_v52 = vmul.f32 0.01, %v429_v49  ;;  %v584_v56 = vmax.f32 %v426_v43, %v552_v48  ;;  %v175_v48 = vpop.permute.xlu0 %174 }
  0xe4   :  { %v587_v54 = vmax.f32 %v437_v46, %v555_v50 }
  0xe5   :  { %v585_v57 = vmax.f32 %v429_v49, %v553_v52  ;;  %v1391_v58 = vpop.f32.mrb[4].mxu0 }
  0xe6   :  { %v1868_v59 = vpack.c.bf16 %v587_v54, %v586_v53  ;;  %v450_v60 = vadd.f32 %v1391_v58, %v135_v30  ;;  %v441_v61 = vpop.f32.mrb[5].mxu0  ;;  %v180_v54 = vpop.permute.xlu1 %179 }
  0xe7   :  { %v1870_v62 = vpack.c.bf16 %v585_v57, %v584_v56  ;;  %v442_v63 = vadd.f32 %v441_v61, %v125_v26  ;;  %v1392_v0 = vpop.f32.mrb[6].mxu0 }
  0xe8   :  { %v558_v1 = vmul.f32 0.01, %v450_v60  ;;  %v453_v2 = vadd.f32 %v1392_v0, %v140_v31  ;;  %v444_v3 = vpop.f32.mrb[7].mxu0 }
  0xe9   :  { %v556_v5 = vmul.f32 0.01, %v442_v63  ;;  %v445_v6 = vadd.f32 %v444_v3, %v130_v27 }
  0xea   :  { %v559_v7 = vmul.f32 0.01, %v453_v2  ;;  %v590_v10 = vmax.f32 %v450_v60, %v558_v1 }
  0xeb   :  { %v557_v9 = vmul.f32 0.01, %v445_v6  ;;  %v588_v12 = vmax.f32 %v442_v63, %v556_v5 }
  0xec   :  { %v591_v11 = vmax.f32 %v453_v2, %v559_v7 }
  0xed   :  { %v589_v14 = vmax.f32 %v445_v6, %v557_v9  ;;  %v1395_v15 = vpop.f32.mrb[8].mxu0 }
  0xee   :  { %v1872_v16 = vpack.c.bf16 %v591_v11, %v590_v10  ;;  %v466_v18 = vadd.f32 %v1395_v15, %v155_v38  ;;  %v457_v19 = vpop.f32.mrb[9].mxu0 }
  0xef   :  { %v1876_v23 = vpack.c.bf16 %v589_v14, %v588_v12  ;;  %v458_v26 = vadd.f32 %v457_v19, %v145_v34  ;;  %v1396_v30 = vpop.f32.mrb[10].mxu0 }
  0xf0   :  { %v562_v31 = vmul.f32 0.01, %v466_v18  ;;  %v469_v27 = vadd.f32 %v1396_v30, %v160_v42  ;;  %v460_v39 = vpop.f32.mrb[11].mxu0 }
  0xf1   :  { %v560_v41 = vmul.f32 0.01, %v458_v26  ;;  %v461_v43 = vadd.f32 %v460_v39, %v150_v35 }
  0xf2   :  { %v563_v44 = vmul.f32 0.01, %v469_v27  ;;  %v594_v46 = vmax.f32 %v466_v18, %v562_v31 }
  0xf3   :  { %v561_v45 = vmul.f32 0.01, %v461_v43  ;;  %v592_v38 = vmax.f32 %v458_v26, %v560_v41 }
  0xf4   :  { %v595_v47 = vmax.f32 %v469_v27, %v563_v44 }
  0xf5   :  { %v593_v49 = vmax.f32 %v461_v43, %v561_v45  ;;  %v1399_v50 = vpop.f32.mrb[12].mxu0 }
  0xf6   :  { %v1880_v52 = vpack.c.bf16 %v595_v47, %v594_v46  ;;  %v482_v53 = vadd.f32 %v1399_v50, %v175_v48  ;;  %v473_v34 = vpop.f32.mrb[13].mxu0 }
  0xf7   :  { %v1882_v56 = vpack.c.bf16 %v593_v49, %v592_v38  ;;  %v474_v42 = vadd.f32 %v473_v34, %v165_v4  ;;  %v1400_v57 = vpop.f32.mrb[14].mxu0 }
  0xf8   :  { %v566_v58 = vmul.f32 0.01, %v482_v53  ;;  %v485_v60 = vadd.f32 %v1400_v57, %v180_v54  ;;  %v476_v35 = vpop.f32.mrb[15].mxu0 }
  0xf9   :  { %v564_v61 = vmul.f32 0.01, %v474_v42  ;;  %v477_v63 = vadd.f32 %v476_v35, %v170_v8 }
  0xfa   :  { %v567_v0 = vmul.f32 0.01, %v485_v60  ;;  %v598_v2 = vmax.f32 %v482_v53, %v566_v58 }
  0xfb   :  { %v565_v1 = vmul.f32 0.01, %v477_v63  ;;  %v596_v5 = vmax.f32 %v474_v42, %v564_v61 }
  0xfc   :  { %v599_v3 = vmax.f32 %v485_v60, %v567_v0 }
  0xfd   :  { %v597_v6 = vmax.f32 %v477_v63, %v565_v1  ;;  %v1403_v7 = vpop.f32.mrb[16].mxu0 }
  0xfe   :  { %v1884_v9 = vpack.c.bf16 %v599_v3, %v598_v2  ;;  %v498_v10 = vadd.f32 %v1403_v7, %v1844_v20  ;;  %v489_v11 = vpop.f32.mrb[17].mxu0 }
  0xff   :  { %v1887_v12 = vpack.c.bf16 %v597_v6, %v596_v5  ;;  %v490_v4 = vadd.f32 %v489_v11, %v1829_v13  ;;  %v1404_v14 = vpop.f32.mrb[18].mxu0 }
 0x100   :  { %v570_v15 = vmul.f32 0.01, %v498_v10  ;;  %v501_v8 = vadd.f32 %v1404_v14, %v1846_v21  ;;  %v492_v18 = vpop.f32.mrb[19].mxu0 }
 0x101   :  { %v568_v19 = vmul.f32 0.01, %v490_v4  ;;  %v493_v26 = vadd.f32 %v492_v18, %v1839_v17 }
 0x102   :  { %v571_v30 = vmul.f32 0.01, %v501_v8  ;;  %v602_v27 = vmax.f32 %v498_v10, %v570_v15 }
 0x103   :  { %v569_v31 = vmul.f32 0.01, %v493_v26  ;;  %v600_v41 = vmax.f32 %v490_v4, %v568_v19 }
 0x104   :  { %v603_v39 = vmax.f32 %v501_v8, %v571_v30 }
 0x105   :  { %v601_v43 = vmax.f32 %v493_v26, %v569_v31  ;;  %v1407_v20 = vpop.f32.mrb[20].mxu0 }
 0x106   :  { %v514_v44 = vadd.f32 %v1407_v20, %v1852_v28  ;;  %v505_v45 = vpop.f32.mrb[21].mxu0  ;;  %v643_v46 = vpack.c.bf16 %v603_v39, %v602_v27  ;;  %v1500_v20 = vld [vmem:[%s2018_s4 + $0x40] ss:$8 sps:$4 sm:$0xff]  }
 0x107   :  { %v506_v13 = vadd.f32 %v505_v45, %v1848_v24  ;;  %v1408_v47 = vpop.f32.mrb[22].mxu0  ;;  %v642_v48 = vpack.c.bf16 %v601_v43, %v600_v41  ;;  %v1497_v41 = vld [vmem:[%s2018_s4 + $0x30] ss:$8 sps:$4 sm:$0xff]   ;;  %v1498_v43 = vld [vmem:[%s2018_s4 + $0x44] ss:$8 sps:$4 sm:$0xff]  }
 0x108   :  { %v574_v21 = vmul.f32 0.01, %v514_v44  ;;  %v517_v38 = vadd.f32 %v1408_v47, %v1854_v29  ;;  %v508_v49 = vpop.f32.mrb[23].mxu0  ;;  %v1503_v45 = vld [vmem:[%s2018_s4 + $0x50] ss:$8 sps:$4 sm:$0xff]  }
 0x109   :  { %v572_v17 = vmul.f32 0.01, %v506_v13  ;;  %v509_v50 = vadd.f32 %v508_v49, %v1850_v25  ;;  %1310 = vmatprep.subr.bf16.mxu1 %v642_v48  ;;  %v1507_v47 = vld [vmem:[%s2018_s4 + $0x74] ss:$8 sps:$4 sm:$0xff]  }
 0x10a   :  { %v575_v53 = vmul.f32 0.01, %v517_v38  ;;  %1311 = vmatpush3.bf16.msra.mxu1 %v1870_v62  ;;  %v606_v28 = vmax.f32 %v514_v44, %v574_v21  ;;  %v1501_v44 = vld [vmem:[%s2018_s4 + $0x54] ss:$8 sps:$4 sm:$0xff]  }
 0x10b   :  { %v573_v34 = vmul.f32 0.01, %v509_v50  ;;  %1312 = vmatprep.subr.bf16.mxu1 %v643_v46  ;;  %v604_v42 = vmax.f32 %v506_v13, %v572_v17  ;;  %v1504_v46 = vld [vmem:[%s2018_s4 + $0x64] ss:$8 sps:$4 sm:$0xff]   ;;  %v1506_v13 = vld [vmem:[%s2018_s4 + $0x60] ss:$8 sps:$4 sm:$0xff]  }
 0x10c   :  { %v607_v54 = vmax.f32 %v517_v38, %v575_v53  ;;  %v1509_v17 = vld [vmem:[%s2018_s4 + $0x70] ss:$8 sps:$4 sm:$0xff]  }
 0x10d   :  { %v605_v57 = vmax.f32 %v509_v50, %v573_v34  ;;  %v1411_v24 = vpop.f32.mrb[24].mxu0 }
 0x10e   :  { %v530_v58 = vadd.f32 %v1411_v24, %v1860_v36  ;;  %v521_v60 = vpop.f32.mrb[25].mxu0  ;;  %1313 = vmatpush3.bf16.msra.mxu1 %v1868_v59  ;;  %v645_v29 = vpack.c.bf16 %v607_v54, %v606_v28 }
 0x10f   :  { %v522_v35 = vadd.f32 %v521_v60, %v1856_v32  ;;  %v1412_v25 = vpop.f32.mrb[26].mxu0  ;;  %v644_v61 = vpack.c.bf16 %v605_v57, %v604_v42 }
 0x110   :  { %v578_v63 = vmul.f32 0.01, %v530_v58  ;;  %v533_v62 = vadd.f32 %v1412_v25, %v1862_v37  ;;  %v524_v0 = vpop.f32.mrb[27].mxu0  ;;  %v1535_v25 = vmov 0.0  }
 0x111   :  { %v576_v1 = vmul.f32 0.01, %v522_v35  ;;  %v525_v2 = vadd.f32 %v524_v0, %v1858_v33  ;;  %1314 = vmatprep.subr.bf16.mxu1 %v644_v61  ;;  %1435 = vmatprep.subr.bf16.mxu0 %v1535_v25 }
 0x112   :  { %v579_v3 = vmul.f32 0.01, %v533_v62  ;;  %1315 = vmatpush3.bf16.msra.mxu1 %v1876_v23  ;;  %v610_v5 = vmax.f32 %v530_v58, %v578_v63  ;;  %v1421_v48 = vpop.f32.mrb[0].mxu1  ;;  %1451 = vmatprep.mubr.msk.bf16.mxu0 %vm1536_vm3, %v1535_v25 }
 0x113   :  { %v577_v36 = vmul.f32 0.01, %v525_v2  ;;  %1316 = vmatprep.subr.bf16.mxu1 %v645_v29  ;;  %v608_v6 = vmax.f32 %v522_v35, %v576_v1  ;;  %v769_v21 = vpop.f32.mrb[1].mxu1 }
 0x114   :  { %v611_v59 = vmax.f32 %v533_v62, %v579_v3  ;;  %v1422_v38 = vpop.f32.mrb[2].mxu1 }
 0x115   :  { %v609_v7 = vmax.f32 %v525_v2, %v577_v36  ;;  %v1415_v32 = vpop.f32.mrb[28].mxu0  ;;  %v772_v49 = vpop.f32.mrb[3].mxu1 }
 0x116   :  { %v546_v10 = vadd.f32 %v1415_v32, %v1874_v22  ;;  %v537_v11 = vpop.f32.mrb[29].mxu0  ;;  %1317 = vmatpush3.bf16.msra.mxu1 %v1872_v16  ;;  %v647_v37 = vpack.c.bf16 %v611_v59, %v610_v5  ;;  %v1028_v36 = vpop.permute.xlu0 %1027 }
 0x117   :  { %v538_v4 = vadd.f32 %v537_v11, %v1864_v51  ;;  %v1416_v33 = vpop.f32.mrb[30].mxu0  ;;  %v646_v14 = vpack.c.bf16 %v609_v7, %v608_v6  ;;  %v1033_v6 = vpop.permute.xlu1 %1032 }
 0x118   :  { %v582_v15 = vmul.f32 0.01, %v546_v10  ;;  %v549_v23 = vadd.f32 %v1416_v33, %v1878_v40  ;;  %v540_v8 = vpop.f32.mrb[31].mxu0  ;;  %v1489_v40 = vld [vmem:[%s2018_s4 + $0x14] ss:$8 sps:$4 sm:$0xff]  }
 0x119   :  { %v580_v18 = vmul.f32 0.01, %v538_v4  ;;  %v541_v19 = vadd.f32 %v540_v8, %v1866_v55  ;;  %1318 = vmatprep.subr.bf16.mxu1 %v646_v14  ;;  %v1486_v55 = vld [vmem:[%s2018_s4] ss:$8 sps:$4 sm:$0xff]  }
 0x11a   :  { %v583_v26 = vmul.f32 0.01, %v549_v23  ;;  %1319 = vmatpush3.bf16.msra.mxu1 %v1882_v56  ;;  %v614_v30 = vmax.f32 %v546_v10, %v582_v15  ;;  %v1492_v56 = vld [vmem:[%s2018_s4 + $0x24] ss:$8 sps:$4 sm:$0xff]   ;;  %v1957_v50 = vpop.f32.mrb[4].mxu1 }
 0x11b   :  { %v581_v22 = vmul.f32 0.01, %v541_v19  ;;  %1320 = vmatprep.subr.bf16.mxu1 %v647_v37  ;;  %v612_v31 = vmax.f32 %v538_v4, %v580_v18  ;;  %v785_v53 = vpop.f32.mrb[5].mxu1 }
 0x11c   :  { %v615_v16 = vmax.f32 %v549_v23, %v583_v26  ;;  %v1959_v34 = vpop.f32.mrb[6].mxu1 }
 0x11d   :  { %v613_v27 = vmax.f32 %v541_v19, %v581_v22  ;;  %v788_v28 = vpop.f32.mrb[7].mxu1  ;;  %v1038_v19 = vpop.permute.xlu0 %1037 }
 0x11e   :  { %1321 = vmatpush3.bf16.msra.mxu1 %v1880_v52  ;;  %v649_v51 = vpack.c.bf16 %v615_v16, %v614_v30  ;;  %v1491_v52 = vld [vmem:[%s2018_s4 + $0x10] ss:$8 sps:$4 sm:$0xff]   ;;  %v1043_v16 = vpop.permute.xlu1 %1042 }
 0x11f   :  { %v648_v39 = vpack.c.bf16 %v613_v27, %v612_v31 }
 0x121   :  { %1322 = vmatprep.subr.bf16.mxu1 %v648_v39 }
 0x122   :  { %1323 = vmatpush3.bf16.msra.mxu1 %v1887_v12  ;;  %v1495_v12 = vld [vmem:[%s2018_s4 + $0x34] ss:$8 sps:$4 sm:$0xff]   ;;  %v1961_v54 = vpop.f32.mrb[8].mxu1 }
 0x123   :  { %1324 = vmatprep.subr.bf16.mxu1 %v649_v51  ;;  %v1963_v42 = vpop.f32.mrb[9].mxu1 }
 0x124   :  { %v1965_v57 = vpop.f32.mrb[10].mxu1 }
 0x125   :  { %v1967_v24 = vpop.f32.mrb[11].mxu1 }
 0x126   :  { %1325 = vmatpush3.bf16.msra.mxu1 %v1884_v9  ;;  %v1494_v9 = vld [vmem:[%s2018_s4 + $0x20] ss:$8 sps:$4 sm:$0xff]  }
 0x129   :  { %945 = vmatmul.mubr.bf16.vlgmr.msra.gmra.mrb[16].mxu1 %v1486_v55 }
 0x12a   :  { %952 = vmatprep.mubr.bf16.mxu1 %v1489_v40  ;;  %v1969_v58 = vpop.f32.mrb[12].mxu1 }
 0x12b   :  { %v1971_v60 = vpop.f32.mrb[13].mxu1 }
 0x12c   :  { %v1973_v29 = vpop.f32.mrb[14].mxu1 }
 0x12d   :  { %v1975_v35 = vpop.f32.mrb[15].mxu1 }
 0x131   :  { %953 = vmatmul.mubr.bf16.gmra.mrb[20].mxu1 %v1491_v52 }
 0x132   :  { %960 = vmatprep.mubr.bf16.mxu1 %v1492_v56 }
 0x139   :  { %961 = vmatmul.mubr.bf16.gmra.mrb[24].mxu1 %v1494_v9 }
 0x13a   :  { %968 = vmatprep.mubr.bf16.mxu1 %v1495_v12 }
 0x141   :  { %969 = vmatmul.mubr.bf16.gmra.mrb[28].mxu1 %v1497_v41 }
 0x142   :  { %976 = vmatprep.mubr.bf16.mxu1 %v1498_v43 }
 0x149   :  { %977 = vmatmul.mubr.bf16.gmra.mrb[32].mxu1 %v1500_v20  ;;  %v1048_v20 = vpop.permute.xlu0 %1047 }
 0x14a   :  { %984 = vmatprep.mubr.bf16.mxu1 %v1501_v44 }
 0x151   :  { %985 = vmatmul.mubr.bf16.gmra.mrb[36].mxu1 %v1503_v45 }
 0x152   :  { %992 = vmatprep.mubr.bf16.mxu1 %v1504_v46 }
 0x159   :  { %993 = vmatmul.mubr.bf16.gmra.mrb[40].mxu1 %v1506_v13  ;;  %v1053_v13 = vpop.permute.xlu1 %1052 }
 0x15a   :  { %1000 = vmatprep.mubr.bf16.mxu1 %v1507_v47 }
 0x161   :  { %1001 = vmatmul.mubr.bf16.gmra.mrb[44].mxu1 %v1509_v17 }
 0x1fc   :  { %v1326_v61 = vpop.f32.mrb[16].mxu1 }
 0x1fd   :  { %v1327_v63 = vpop.f32.mrb[17].mxu1 }
 0x1fe   :  { %v1328_v62 = vadd.f32 %v1327_v63, %v1326_v61  ;;  %v1329_v0 = vpop.f32.mrb[18].mxu1 }
 0x1ff   :  { %v1330_v1 = vpop.f32.mrb[19].mxu1 }
 0x200   :  { %v947_v2 = vadd.f32 %v1328_v62, %v769_v21  ;;  %v1331_v3 = vadd.f32 %v1330_v1, %v1329_v0 }
 0x202   :  { %v1105_v5 = vadd.f32 %v1028_v36, %v947_v2  ;;  %v950_v59 = vadd.f32 %v1331_v3, %v772_v49  ;;  %v1058_v2 = vpop.permute.xlu0 %1057 }
 0x204   :  { %v1121_v7 = vmul.f32 0.01, %v1105_v5  ;;  %v1106_v32 = vadd.f32 %v1033_v6, %v950_v59  ;;  %v1332_v10 = vpop.f32.mrb[20].mxu1 }
 0x205   :  { %v1333_v11 = vpop.f32.mrb[21].mxu1 }
 0x206   :  { %v1122_v37 = vmul.f32 0.01, %v1106_v32  ;;  %v1334_v4 = vadd.f32 %v1333_v11, %v1332_v10  ;;  %v1335_v33 = vpop.f32.mrb[22].mxu1  ;;  %v1137_v15 = vmax.f32 %v1105_v5, %v1121_v7  ;;  %v1063_v5 = vpop.permute.xlu1 %1062 }
 0x207   :  { %v1336_v14 = vpop.f32.mrb[23].mxu1 }
 0x208   :  { %v1138_v23 = vmax.f32 %v1106_v32, %v1122_v37  ;;  %v955_v8 = vadd.f32 %v1421_v48, %v1334_v4  ;;  %v1337_v18 = vadd.f32 %v1336_v14, %v1335_v33 }
 0x20a   :  { %v1107_v26 = vadd.f32 %v1038_v19, %v955_v8  ;;  %v958_v22 = vadd.f32 %v1422_v38, %v1337_v18  ;;  %v1154_v30 = vpack.c.bf16 %v1138_v23, %v1137_v15  ;;  %v1068_v23 = vpop.permute.xlu0 %1067  ;;  %v1073_v19 = vpop.permute.xlu1 %1072 }
 0x20c   :  { %v1123_v31 = vmul.f32 0.01, %v1107_v26  ;;  %v1108_v27 = vadd.f32 %v1043_v16, %v958_v22  ;;  %v1338_v51 = vpop.f32.mrb[24].mxu1  ;;  %1436 = vmatpush3.bf16.msra.mxu0 %v1154_v30 }
 0x20d   :  { %v1339_v39 = vpop.f32.mrb[25].mxu1  ;;  %1437 = vmatprep.subr.bf16.mxu0 %v1535_v25 }
 0x20e   :  { %v1124_v55 = vmul.f32 0.01, %v1108_v27  ;;  %v1340_v40 = vadd.f32 %v1339_v39, %v1338_v51  ;;  %v1341_v52 = vpop.f32.mrb[26].mxu1  ;;  %v1139_v9 = vmax.f32 %v1107_v26, %v1123_v31 }
 0x20f   :  { %v1342_v56 = vpop.f32.mrb[27].mxu1 }
 0x210   :  { %v1140_v12 = vmax.f32 %v1108_v27, %v1124_v55  ;;  %v963_v41 = vadd.f32 %v1340_v40, %v785_v53  ;;  %v1343_v43 = vadd.f32 %v1342_v56, %v1341_v52  ;;  %v1078_v56 = vpop.permute.xlu0 %1077 }
 0x212   :  { %v1109_v44 = vadd.f32 %v1048_v20, %v963_v41  ;;  %v966_v45 = vadd.f32 %v1343_v43, %v788_v28  ;;  %v1155_v46 = vpack.c.bf16 %v1140_v12, %v1139_v9  ;;  %v1083_v41 = vpop.permute.xlu1 %1082 }
 0x214   :  { %v1125_v47 = vmul.f32 0.01, %v1109_v44  ;;  %v1110_v48 = vadd.f32 %v1053_v13, %v966_v45  ;;  %v1344_v21 = vpop.f32.mrb[28].mxu1  ;;  %1438 = vmatpush3.bf16.msra.mxu0 %v1155_v46 }
 0x215   :  { %v1345_v38 = vpop.f32.mrb[29].mxu1  ;;  %1439 = vmatprep.subr.bf16.mxu0 %v1535_v25 }
 0x216   :  { %v1126_v49 = vmul.f32 0.01, %v1110_v48  ;;  %v1346_v17 = vadd.f32 %v1345_v38, %v1344_v21  ;;  %v1347_v61 = vpop.f32.mrb[30].mxu1  ;;  %v1141_v62 = vmax.f32 %v1109_v44, %v1125_v47 }
 0x217   :  { %v1348_v63 = vpop.f32.mrb[31].mxu1 }
 0x218   :  { %v1142_v0 = vmax.f32 %v1110_v48, %v1126_v49  ;;  %v971_v53 = vadd.f32 %v1957_v50, %v1346_v17  ;;  %v1349_v1 = vadd.f32 %v1348_v63, %v1347_v61  ;;  %v1088_v17 = vpop.permute.xlu0 %1087 }
 0x21a   :  { %v1111_v28 = vadd.f32 %v1058_v2, %v971_v53  ;;  %v974_v3 = vadd.f32 %v1959_v34, %v1349_v1  ;;  %v1156_v36 = vpack.c.bf16 %v1142_v0, %v1141_v62  ;;  %v1093_v62 = vpop.permute.xlu1 %1092 }
 0x21c   :  { %v1127_v59 = vmul.f32 0.01, %v1111_v28  ;;  %v1112_v6 = vadd.f32 %v1063_v5, %v974_v3  ;;  %v1350_v7 = vpop.f32.mrb[32].mxu1  ;;  %1440 = vmatpush3.bf16.msra.mxu0 %v1156_v36 }
 0x21d   :  { %v1351_v32 = vpop.f32.mrb[33].mxu1  ;;  %1441 = vmatprep.subr.bf16.mxu0 %v1535_v25 }
 0x21e   :  { %v1128_v10 = vmul.f32 0.01, %v1112_v6  ;;  %v1352_v11 = vadd.f32 %v1351_v32, %v1350_v7  ;;  %v1353_v37 = vpop.f32.mrb[34].mxu1  ;;  %v1143_v33 = vmax.f32 %v1111_v28, %v1127_v59  ;;  %v1098_v32 = vpop.permute.xlu0 %1097 }
 0x21f   :  { %v1354_v4 = vpop.f32.mrb[35].mxu1 }
 0x220   :  { %v1144_v50 = vmax.f32 %v1112_v6, %v1128_v10  ;;  %v979_v14 = vadd.f32 %v1352_v11, %v1963_v42  ;;  %v1355_v15 = vadd.f32 %v1354_v4, %v1353_v37  ;;  %v1103_v37 = vpop.permute.xlu1 %1102 }
 0x222   :  { %v1113_v34 = vadd.f32 %v1068_v23, %v979_v14  ;;  %v982_v8 = vadd.f32 %v1355_v15, %v1967_v24  ;;  %v1157_v18 = vpack.c.bf16 %v1144_v50, %v1143_v33 }
 0x224   :  { %v1129_v26 = vmul.f32 0.01, %v1113_v34  ;;  %v1114_v22 = vadd.f32 %v1073_v19, %v982_v8  ;;  %v1356_v30 = vpop.f32.mrb[36].mxu1  ;;  %1442 = vmatpush3.bf16.msra.mxu0 %v1157_v18 }
 0x225   :  { %v1357_v16 = vpop.f32.mrb[37].mxu1  ;;  %1443 = vmatprep.subr.bf16.mxu0 %v1535_v25 }
 0x226   :  { %v1130_v31 = vmul.f32 0.01, %v1114_v22  ;;  %v1358_v27 = vadd.f32 %v1357_v16, %v1356_v30  ;;  %v1359_v51 = vpop.f32.mrb[38].mxu1  ;;  %v1145_v55 = vmax.f32 %v1113_v34, %v1129_v26 }
 0x227   :  { %v1360_v39 = vpop.f32.mrb[39].mxu1 }
 0x228   :  { %v1146_v42 = vmax.f32 %v1114_v22, %v1130_v31  ;;  %v987_v40 = vadd.f32 %v1961_v54, %v1358_v27  ;;  %v1361_v52 = vadd.f32 %v1360_v39, %v1359_v51 }
 0x22a   :  { %v1115_v24 = vadd.f32 %v1078_v56, %v987_v40  ;;  %v990_v9 = vadd.f32 %v1965_v57, %v1361_v52  ;;  %v1158_v12 = vpack.c.bf16 %v1146_v42, %v1145_v55 }
 0x22c   :  { %v1131_v43 = vmul.f32 0.01, %v1115_v24  ;;  %v1116_v20 = vadd.f32 %v1083_v41, %v990_v9  ;;  %v1362_v44 = vpop.f32.mrb[40].mxu1  ;;  %1444 = vmatpush3.bf16.msra.mxu0 %v1158_v12 }
 0x22d   :  { %v1363_v45 = vpop.f32.mrb[41].mxu1  ;;  %1445 = vmatprep.subr.bf16.mxu0 %v1535_v25 }
 0x22e   :  { %v1132_v46 = vmul.f32 0.01, %v1116_v20  ;;  %v1364_v13 = vadd.f32 %v1363_v45, %v1362_v44  ;;  %v1365_v47 = vpop.f32.mrb[42].mxu1  ;;  %v1147_v21 = vmax.f32 %v1115_v24, %v1131_v43 }
 0x22f   :  { %v1366_v48 = vpop.f32.mrb[43].mxu1 }
 0x230   :  { %v1148_v54 = vmax.f32 %v1116_v20, %v1132_v46  ;;  %v995_v38 = vadd.f32 %v1364_v13, %v1971_v60  ;;  %v1367_v49 = vadd.f32 %v1366_v48, %v1365_v47 }
 0x232   :  { %v1117_v57 = vadd.f32 %v1088_v17, %v995_v38  ;;  %v998_v61 = vadd.f32 %v1367_v49, %v1975_v35  ;;  %v1159_v63 = vpack.c.bf16 %v1148_v54, %v1147_v21 }
 0x234   :  { %v1133_v0 = vmul.f32 0.01, %v1117_v57  ;;  %v1118_v53 = vadd.f32 %v1093_v62, %v998_v61  ;;  %v1368_v1 = vpop.f32.mrb[44].mxu1  ;;  %1446 = vmatpush3.bf16.msra.mxu0 %v1159_v63 }
 0x235   :  { %v1369_v2 = vpop.f32.mrb[45].mxu1  ;;  %1447 = vmatprep.subr.bf16.mxu0 %v1535_v25 }
 0x236   :  { %v1134_v28 = vmul.f32 0.01, %v1118_v53  ;;  %v1370_v3 = vadd.f32 %v1369_v2, %v1368_v1  ;;  %v1371_v36 = vpop.f32.mrb[46].mxu1  ;;  %v1149_v59 = vmax.f32 %v1117_v57, %v1133_v0 }
 0x237   :  { %v1372_v5 = vpop.f32.mrb[47].mxu1 }
 0x238   :  { %v1150_v60 = vmax.f32 %v1118_v53, %v1134_v28  ;;  %v1003_v6 = vadd.f32 %v1969_v58, %v1370_v3  ;;  %v1373_v7 = vadd.f32 %v1372_v5, %v1371_v36  ;;  %v1153_v58 = vld [vmem:[%s2021_s7] sm:$0x1] }
 0x23a   :  { %v1119_v35 = vadd.f32 %v1098_v32, %v1003_v6  ;;  %v1006_v10 = vadd.f32 %v1973_v29, %v1373_v7  ;;  %v1160_v11 = vpack.c.bf16 %v1150_v60, %v1149_v59  ;;  %v1163_v29 = vstv %s2022_s8 }
 0x23c   :  { %v1135_v4 = vmul.f32 0.01, %v1119_v35  ;;  %v1120_v33 = vadd.f32 %v1103_v37, %v1006_v10  ;;  %1448 = vmatpush3.bf16.msra.mxu0 %v1160_v11 }
 0x23d   :  { %1449 = vmatprep.subr.bf16.mxu0 %v1535_v25 }
 0x23e   :  { %v1136_v50 = vmul.f32 0.01, %v1120_v33  ;;  %v1151_v14 = vmax.f32 %v1119_v35, %v1135_v4 }
 0x240   :  { %v1152_v15 = vmax.f32 %v1120_v33, %v1136_v50 }
 0x242   :  { %v1161_v23 = vpack.c.bf16 %v1152_v15, %v1151_v14 }
 0x244   :  { %1450 = vmatpush3.bf16.msra.mxu0 %v1161_v23 }
 0x247   :  { %1452 = vmatmul.mubr.bf16.vlgmr.msra.gmra.mrb[32].mxu0 %v1153_v58 }
 0x31a   :  { %v1198_v34 = vpop.f32.mrb[32].mxu0 }
 0x31b   :  { %v1199_v8 = vadd.f32 %v1198_v34, %v1163_v29  ;;  %v1453_v25 = vpop.f32.mrb[33].mxu0 }
 0x31c   :  { %v1201_v18 = vpop.f32.mrb[34].mxu0 }
 0x31d   :  { %v1454_v19 = vpop.f32.mrb[35].mxu0  ;;  %1205 = vst.msk [vmem:[#allocation3] sm:$0x1] %vm1204_vm4, %v1199_v8 }
 0x31e   :  { %1521 = shalt.err (!%p1518_p4)
}
 0x31f   :  { %s1522_s29 = scalar_lea.hbm %s2023_s9, 16 }
 0x320   :  { %p1523_p5 = scmp.ne.s32.totalorder %s2023_s9, %s1522_s29  ;;  %p1526_p6 = scmp.lt.u32.totalorder %s1522_s29, %s2023_s9 }
 0x322   :  { %p1528_p7 = pnand %p1526_p6, %p1523_p5 }
 0x324   :  { %1531 = shalt.err (!%p1528_p7)
}
 0x325   :  { %1215 = dma.vmem_to_hbm [thread:$0]  %s1213_s26, 16, %s2023_s9, [#allocation4]  }
 0x326   :  { %1532 = dma.done.wait [#allocation4], 16  }
 0x327   :  { %1533 = vsyncadd [#allocation4], 4294967280 }
 0x328   :  { %1219 = vsyncpa [#allocation4], 1 }

</bundles_post_ra>
